<compile_context>
chip_gen: v6e
topology: v6e:2x2x1
jax: 0.10.0
libtpu: 0.0.40
codegen_flags: <defaults>
</compile_context>

<pallas_src>
import math

import jax
import jax.numpy as jnp
from jax import lax
from jax.experimental import pallas as pl
from jax.experimental.pallas import tpu as pltpu


# ----------------------------------------------------------------------------
# Pallas kernels — one grid step = BB clips, full (T, N, D) extent
# ----------------------------------------------------------------------------
def _make_dm_kernel(Ta, Td, N, D, T_total, sign):
    """'DM' / 'DMR' / 'DM_make_mean_image' kernel.

    x_ref   : (BB, Ta, N, D)   clips
    xd_ref  : (BB, Td, N-1, D) frame differences (Td == Ta - 1)
    out_ref : (N, BB, Ta, D)   inter_x, already token-major (transposed) layout
    md_ref  : (BB, N-1, D)     temporal mean of the differences
    """
    inv_td = 1.0 / float(Td)

    def kernel(x_ref, xd_ref, out_ref, md_ref):
        # Temporal mean of the differences, accumulated in f32 (review).
        acc = xd_ref[:, 0, :, :].astype(jnp.float32)
        for t in range(1, Td):
            acc = acc + xd_ref[:, t, :, :].astype(jnp.float32)
        md = acc * inv_td                                       # (BB, N-1, D)
        md_ref[...] = md.astype(md_ref.dtype)

        # Per-frame coefficient, faithful to `for i in range(T-1)` in PyTorch:
        # frame i gets coefficient i iff i < T_total - 1, else 0
        # (T_total is the caller's T; axis-2 size Ta may be smaller when S>1).
        t_idx = lax.broadcasted_iota(jnp.int32, (1, Ta, 1), 1)
        coef = jnp.where(t_idx < T_total - 1, t_idx, 0).astype(jnp.float32)
        scoef = coef * sign                                     # (1, Ta, 1)

        # Token 0 (CLS) is untouched.  Every store below is one aligned
        # (BB, Ta, D) slab — no sublane-offset masked writes (review).
        out_ref[0] = x_ref[:, :, 0, :].astype(out_ref.dtype)
        for n in range(1, N):
            xn = x_ref[:, :, n, :].astype(jnp.float32)          # (BB, Ta, D)
            add = scoef * md[:, n - 1, :][:, None, :]           # (BB, Ta, D)
            out_ref[n] = (xn + add).astype(out_ref.dtype)

    return kernel


def _make_jb_kernel(Ta, Td, N, D):
    """'JB' kernel.  Only frame 0 of x is needed, so x0_ref is (BB, N, D)."""
    inv_td = 1.0 / float(Td)

    def kernel(x0_ref, xd_ref, out_ref, md_ref):
        acc = xd_ref[:, 0, :, :].astype(jnp.float32)
        for t in range(1, Td):
            acc = acc + xd_ref[:, t, :, :].astype(jnp.float32)
        md_ref[...] = (acc * inv_td).astype(md_ref.dtype)

        # Token 0 (CLS): every frame copies frame-0's CLS token.  Single slab
        # store; the broadcast is hoisted out of the token loop.
        cls = x0_ref[:, 0:1, :]                                 # (BB, 1, D)
        out_ref[0] = jnp.broadcast_to(
            cls, (cls.shape[0], Ta, cls.shape[2])).astype(out_ref.dtype)

        for n in range(1, N):
            x0n = x0_ref[:, n, :].astype(jnp.float32)           # (BB, D)
            dn = xd_ref[:, :, n - 1, :].astype(jnp.float32)     # (BB, Td, D)
            frames = jnp.concatenate(
                [x0n[:, None, :], x0n[:, None, :] + dn], axis=1)  # (BB, Ta, D)
            out_ref[n] = frames.astype(out_ref.dtype)

    return kernel


# ----------------------------------------------------------------------------
# Block-size selection (review opts #1 / v7x VMEM sizing)
# ----------------------------------------------------------------------------
def _pick_clip_block(BS, Ta, Td, N, D, itemsize, budget_bytes):
    """Largest divisor BB of BS whose double-buffered tiles fit the budget."""
    def resident(bb):
        x_blk = bb * Ta * N * D * itemsize
        xd_blk = bb * Td * (N - 1) * D * itemsize
        out_blk = N * bb * Ta * D * itemsize
        md_blk = bb * (N - 1) * D * itemsize
        return 2 * (x_blk + xd_blk + out_blk + md_blk)   # Pallas double-buffers

    bb = 1
    for cand in range(1, BS + 1):
        if BS % cand == 0 and resident(cand) <= budget_bytes:
            bb = cand
    return bb, resident(bb)


# ----------------------------------------------------------------------------
# differ_agg — Pallas wrapper
# ----------------------------------------------------------------------------
def differ_agg_pallas(inter_type, x, x_differ, T, S, *,
                      block_budget_bytes=12 * 1024 * 1024):
    """Pallas differ_agg. Returns (inter_x, video_cls, mean_difference)."""
    if inter_type not in ('JB', 'DM', 'DMR', 'DM_make_mean_image'):
        raise ValueError(f"unsupported inter_type: {inter_type!r}")

    if S == 1:
        # PyTorch: x.unsqueeze(1); x_differ.permute(0, 2, 1, 3, 4)
        x5 = x[:, None]                                   # (B, 1, Ta, N, D)
        xd5 = jnp.transpose(x_differ, (0, 2, 1, 3, 4))    # (B, 1, Ta-1, N-1, D)
    else:
        x5, xd5 = x, x_differ

    B, Sa, Ta, N, D = x5.shape
    Td, Nd = Ta - 1, N - 1
    BS = B * Sa
    dtype = x5.dtype

    xf = x5.reshape(BS, Ta, N, D)          # contiguous merge -> free
    xdf = xd5.reshape(BS, Td, Nd, D)       # contiguous merge -> free

    BB, vmem_est = _pick_clip_block(BS, Ta, Td, N, D,
                                    jnp.dtype(dtype).itemsize,
                                    block_budget_bytes)
    # Only raise the scoped-VMEM limit when even the minimum-size tiles need
    # it (production-sized clips); small shapes keep the per-generation
    # default (v5e 16 MiB, v6e/v7x 32 MiB) untouched.
    vmem_limit = None
    if vmem_est > 12 * 1024 * 1024:
        vmem_limit = min(vmem_est + (8 << 20), 56 << 20)

    if inter_type == 'JB':
        kernel = _make_jb_kernel(Ta, Td, N, D)
        # JB only reads frame 0 of x — don't DMA the other frames.
        x_spec = pl.BlockSpec((BB, None, N, D), lambda b: (b, 0, 0, 0))
    else:
        sign = -1.0 if inter_type == 'DM_make_mean_image' else 1.0
        kernel = _make_dm_kernel(Ta, Td, N, D, int(T), sign)
        x_spec = pl.BlockSpec((BB, Ta, N, D), lambda b: (b, 0, 0, 0))

    inter_arr, md_arr = pl.pallas_call(
        kernel,
        out_shape=(jax.ShapeDtypeStruct((N, BS, Ta, D), dtype),  # token-major
                   jax.ShapeDtypeStruct((BS, Nd, D), dtype)),
        grid=(BS // BB,),
        in_specs=[x_spec,
                  pl.BlockSpec((BB, Td, Nd, D), lambda b: (b, 0, 0, 0))],
        out_specs=(pl.BlockSpec((N, BB, Ta, D), lambda b: (0, b, 0, 0)),
                   pl.BlockSpec((BB, Nd, D), lambda b: (b, 0, 0))),
        compiler_params=pltpu.CompilerParams(
            dimension_semantics=("parallel",),
            vmem_limit_bytes=vmem_limit),
    )(xf, xdf)

    # inter_x.view(-1, N, D).permute(1, 0, 2) is a *free* reshape of the
    # token-major kernel output — no extra HBM pass (review opt #4).
    inter_out = inter_arr.reshape(N, BS * Ta, D)

    cls_slab = inter_arr[0]                                # (BS, Ta, D), small
    if S == 1:
        video_cls = cls_slab.reshape(B, Ta, D)
    else:
        video_cls = cls_slab.reshape(B, Sa * Ta, D)

    mean_difference = md_arr.reshape(B, Sa, 1, Nd, D)
    return inter_out, video_cls, mean_difference


# ----------------------------------------------------------------------------
# Pure-JAX reference (mirrors the PyTorch differ_agg semantics)
# ----------------------------------------------------------------------------
def ref_differ_agg(inter_type, x, x_differ, T, S):
    if S == 1:
        x5 = x[:, None]
        xd5 = jnp.transpose(x_differ, (0, 2, 1, 3, 4))
    else:
        x5, xd5 = x, x_differ
    B, Sa, Ta, N, D = x5.shape
    md = jnp.mean(xd5, axis=2, keepdims=True)              # (B, Sa, 1, N-1, D)

    if inter_type == 'JB':
        frame0 = x5[:, :, :1]
        rest = jnp.broadcast_to(frame0, (B, Sa, Ta - 1, N, D))
        rest = rest.at[:, :, :, 1:, :].add(xd5)
        inter = jnp.concatenate([frame0, rest], axis=2)
    else:
        # 'DM', 'DMR' (aliasing makes it identical to 'DM'), 'DM_make_mean_image'
        sign = -1.0 if inter_type == 'DM_make_mean_image' else 1.0
        idx = jnp.arange(Ta)
        coef = jnp.where(idx < T - 1, idx, 0).astype(x5.dtype)
        add = sign * coef[None, None, :, None, None] * md
        inter = x5.at[:, :, :, 1:, :].add(add)

    if S == 1:
        video_cls = inter[:, 0, :, 0, :]
    else:
        video_cls = inter[:, :, :, 0, :].reshape(B, Sa * Ta, D)
    inter_out = inter.reshape(-1, N, D).transpose(1, 0, 2)
    return inter_out, video_cls, md


# ----------------------------------------------------------------------------
# Full differ_block forward (fc1 / Conv3d / fc2 stay as XLA ops)
# ----------------------------------------------------------------------------
def quick_gelu(v):
    return v * jax.nn.sigmoid(1.702 * v)


def init_differ_block_params(key, input_channel, kernel_size):
    """Parameters for the fc1 / Conv3d / fc2 layers of differ_block.

    NOTE: the PyTorch module zero-initialises conv weight/bias and fc1 bias
    (the conv branch is inert at init).  Small random weights are used here so
    the full data path is actually exercised.
    """
    C = input_channel
    Ca = C // 2
    k1, k2, k3, k4 = jax.random.split(key, 4)
    scale = 0.05
    return dict(
        fc1_w=scale * jax.random.normal(k1, (Ca, C), jnp.float32),
        fc1_b=jnp.zeros((Ca,), jnp.float32),
        conv_w=scale * jax.random.normal(k2, (Ca, Ca) + tuple(kernel_size),
                                         jnp.float32),
        conv_b=scale * jax.random.normal(k3, (Ca,), jnp.float32),
        fc2_w=scale * jax.random.normal(k4, (C, Ca), jnp.float32),
        fc2_b=jnp.zeros((C,), jnp.float32),
        kernel_size=tuple(kernel_size),
    )


def differ_block_forward(params, x, T, S, inter_type, agg_fn):
    """JAX mirror of differ_block.forward; the differ_agg hot path is agg_fn."""
    # TODO(synk): fc1 -> GELU -> Conv3d -> fc2 -> GELU are left as plain XLA
    # ops (MXU matmul / conv are already optimal there); only the memory-bound
    # differ_agg aggregation runs as a Pallas kernel.
    L, BT, C = x.shape
    Clip = T // S
    if S == 1:
        diff_S, diff_Clip = S, Clip - 1
    else:
        diff_S, diff_Clip = S - 1, Clip
    B = BT // T
    Ca = C // 2
    H = W = round(math.sqrt(L - 1))

    xt = jnp.transpose(x, (1, 0, 2)).reshape(B, Clip, S, L, C)
    if S == 1:
        xt = xt[:, :, 0]                                  # (B, T, L, C)
        xd = xt[:, 1:] - xt[:, :-1]
    else:
        xd = xt[:, :, 1:] - xt[:, :, :-1]
    xd = xd.reshape(-1, L, C)[:, 1:, :]
    xd = quick_gelu(xd @ params['fc1_w'].T + params['fc1_b'])
    xd = xd.reshape(B, diff_Clip, diff_S, H, W, Ca)
    if S == 1:
        xd = jnp.transpose(xd, (0, 2, 5, 1, 3, 4)).reshape(
            B * diff_S, Ca, diff_Clip, H, W)
    else:
        xd = jnp.transpose(xd, (0, 1, 5, 2, 3, 4)).reshape(
            B * diff_Clip, Ca, diff_S, H, W)
    pads = [(k // 2, k // 2) for k in params['kernel_size']]
    xd = lax.conv_general_dilated(
        xd, params['conv_w'], window_strides=(1, 1, 1), padding=pads,
        dimension_numbers=('NCDHW', 'OIDHW', 'NCDHW'))
    xd = xd + params['conv_b'][None, :, None, None, None]
    xd = jnp.transpose(xd, (0, 2, 3, 4, 1)).reshape(
        B * diff_Clip * diff_S, L - 1, Ca)
    xd = quick_gelu(xd @ params['fc2_w'].T + params['fc2_b'])
    x_differ = xd.reshape(B, diff_Clip, diff_S, L - 1, C)

    inter_x, video_cls, mean_difference = agg_fn(inter_type, xt, x_differ, T, S)
    return inter_x, mean_difference, video_cls


# ----------------------------------------------------------------------------
def _check(name, got, want, atol=1e-5, rtol=1e-5):
    assert len(got) == len(want)
    for i, (g, w) in enumerate(zip(got, want)):
        assert g.shape == w.shape, (name, i, g.shape, w.shape)
        assert jnp.allclose(g, w, atol=atol, rtol=rtol), (
            f"{name}: output {i} mismatch "
            f"(max abs err {float(jnp.max(jnp.abs(g - w))):.3e})")


if __name__ == "__main__":
    key = jax.random.PRNGKey(0)

    # ---- differ_agg, S > 1, 'DM' (forces BB=1 -> multi-step grid) ---------
    B, Clip, S, N, D = 2, 2, 3, 9, 32
    T = Clip * S
    k1, k2, key = jax.random.split(key, 3)
    x = jax.random.normal(k1, (B, Clip, S, N, D), jnp.float32)
    xd = jax.random.normal(k2, (B, Clip, S - 1, N - 1, D), jnp.float32)
    out = differ_agg_pallas('DM', x, xd, T, S, block_budget_bytes=1)
    jax.block_until_ready(out)
    _check("DM S>1", out, ref_differ_agg('DM', x, xd, T, S))

    # ---- differ_agg, S == 1, 'JB' ------------------------------------------
    B, T, N, D = 2, 4, 9, 32
    k1, k2, key = jax.random.split(key, 3)
    x1 = jax.random.normal(k1, (B, T, N, D), jnp.float32)
    xd1 = jax.random.normal(k2, (B, T - 1, 1, N - 1, D), jnp.float32)
    out1 = differ_agg_pallas('JB', x1, xd1, T, 1)
    jax.block_until_ready(out1)
    _check("JB S=1", out1, ref_differ_agg('JB', x1, xd1, T, 1))

    # ---- differ_agg, S == 1, 'DM_make_mean_image' ---------------------------
    out2 = differ_agg_pallas('DM_make_mean_image', x1, xd1, T, 1)
    jax.block_until_ready(out2)
    _check("DM_make_mean_image S=1", out2,
           ref_differ_agg('DM_make_mean_image', x1, xd1, T, 1))

    # ---- full differ_block, S == 1, 'DM' ------------------------------------
    C, L, T, B = 32, 10, 4, 2               # L - 1 = 9 = 3 * 3
    kp, kx, key = jax.random.split(key, 3)
    params = init_differ_block_params(kp, C, (3, 3, 3))
    xblk = jax.random.normal(kx, (L, B * T, C), jnp.float32)
    got = differ_block_forward(params, xblk, T, 1, 'DM', differ_agg_pallas)
    jax.block_until_ready(got)
    want = differ_block_forward(params, xblk, T, 1, 'DM', ref_differ_agg)
    _check("differ_block DM S=1", got, want)

    # ---- full differ_block, S == 2, 'JB' ------------------------------------
    got = differ_block_forward(params, xblk, T, 2, 'JB', differ_agg_pallas)
    jax.block_until_ready(got)
    want = differ_block_forward(params, xblk, T, 2, 'JB', ref_differ_agg)
    _check("differ_block JB S=2", got, want)

    print("KERNEL_OK")
</pallas_src>

<mosaic_0001>
module attributes {stable_mosaic.version = 11 : i64} {
  func.func @kernel(%arg0: i32, %arg1: memref<1x3x9x32xf32, #tpu.memory_space<vmem>>, %arg2: memref<1x2x8x32xf32, #tpu.memory_space<vmem>>, %arg3: memref<9x1x3x32xf32, #tpu.memory_space<vmem>>, %arg4: memref<1x8x32xf32, #tpu.memory_space<vmem>>) attributes {dimension_semantics = [#tpu.dimension_semantics<parallel>], iteration_bounds = array<i64: 4>, scalar_prefetch = 0 : i64, scratch_operands = 0 : i64, tpu.core_type = #tpu.core_type<tc>, window_params = [{transform_indices = @transform_0, window_bounds = array<i64: 1, 3, 9, 32>}, {transform_indices = @transform_1, window_bounds = array<i64: 1, 2, 8, 32>}, {transform_indices = @transform_2, window_bounds = array<i64: 9, 1, 3, 32>}, {transform_indices = @transform_3, window_bounds = array<i64: 1, 8, 32>}]} {
    %c0 = arith.constant 0 : index
    %c0_0 = arith.constant 0 : index
    %c0_1 = arith.constant 0 : index
    %c0_2 = arith.constant 0 : index
    %0 = vector.load %arg2[%c0, %c0_0, %c0_1, %c0_2] : memref<1x2x8x32xf32, #tpu.memory_space<vmem>>, vector<1x1x8x32xf32>
    %1 = vector.shape_cast %0 : vector<1x1x8x32xf32> to vector<1x8x32xf32>
    %c0_3 = arith.constant 0 : index
    %c1 = arith.constant 1 : index
    %c0_4 = arith.constant 0 : index
    %c0_5 = arith.constant 0 : index
    %2 = vector.load %arg2[%c0_3, %c1, %c0_4, %c0_5] : memref<1x2x8x32xf32, #tpu.memory_space<vmem>>, vector<1x1x8x32xf32>
    %3 = vector.shape_cast %2 : vector<1x1x8x32xf32> to vector<1x8x32xf32>
    %4 = arith.addf %1, %3 : vector<1x8x32xf32>
    %cst = arith.constant 5.000000e-01 : f32
    %5 = vector.broadcast %cst : f32 to vector<1x8x32xf32>
    %6 = arith.mulf %4, %5 : vector<1x8x32xf32>
    %c0_6 = arith.constant 0 : index
    %c0_7 = arith.constant 0 : index
    %c0_8 = arith.constant 0 : index
    %7 = vector.load %arg4[%c0_6, %c0_7, %c0_8] : memref<1x8x32xf32, #tpu.memory_space<vmem>>, vector<1x8x32xf32>
    tpu.vector_store %arg4[%c0_6, %c0_7, %c0_8], %6 {strides = array<i32>} : memref<1x8x32xf32, #tpu.memory_space<vmem>>, vector<1x8x32xf32>,
    %8 = tpu.iota {dimensions = array<i32: 1>} : vector<1x3x1xi32>
    %c5_i32 = arith.constant 5 : i32
    %9 = vector.broadcast %c5_i32 : i32 to vector<1x3x1xi32>
    %10 = arith.cmpi slt, %8, %9 : vector<1x3x1xi32>
    %c0_i32 = arith.constant 0 : i32
    %11 = vector.broadcast %c0_i32 : i32 to vector<1x3x1xi32>
    %12 = arith.select %10, %8, %11 : vector<1x3x1xi1>, vector<1x3x1xi32>
    %13 = arith.sitofp %12 : vector<1x3x1xi32> to vector<1x3x1xf32>
    %cst_9 = arith.constant 1.000000e+00 : f32
    %14 = vector.broadcast %cst_9 : f32 to vector<1x3x1xf32>
    %15 = arith.mulf %13, %14 : vector<1x3x1xf32>
    %c0_10 = arith.constant 0 : index
    %c0_11 = arith.constant 0 : index
    %c0_12 = arith.constant 0 : index
    %c0_13 = arith.constant 0 : index
    %16 = vector.load %arg1[%c0_10, %c0_11, %c0_12, %c0_13] : memref<1x3x9x32xf32, #tpu.memory_space<vmem>>, vector<1x3x1x32xf32>
    %17 = vector.shape_cast %16 : vector<1x3x1x32xf32> to vector<1x3x32xf32>
    %c0_14 = arith.constant 0 : index
    %c0_15 = arith.constant 0 : index
    %c0_16 = arith.constant 0 : index
    %c0_17 = arith.constant 0 : index
    %18 = vector.load %arg3[%c0_14, %c0_15, %c0_16, %c0_17] : memref<9x1x3x32xf32, #tpu.memory_space<vmem>>, vector<1x1x3x32xf32>
    %19 = vector.shape_cast %18 : vector<1x1x3x32xf32> to vector<1x3x32xf32>
    %20 = vector.shape_cast %17 : vector<1x3x32xf32> to vector<1x1x3x32xf32>
    tpu.vector_store %arg3[%c0_14, %c0_15, %c0_16, %c0_17], %20 {strides = array<i32>} : memref<9x1x3x32xf32, #tpu.memory_space<vmem>>, vector<1x1x3x32xf32>,
    %c0_18 = arith.constant 0 : index
    %c0_19 = arith.constant 0 : index
    %c1_20 = arith.constant 1 : index
    %c0_21 = arith.constant 0 : index
    %21 = vector.load %arg1[%c0_18, %c0_19, %c1_20, %c0_21] : memref<1x3x9x32xf32, #tpu.memory_space<vmem>>, vector<1x3x1x32xf32>
    %22 = vector.shape_cast %21 : vector<1x3x1x32xf32> to vector<1x3x32xf32>
    %23 = vector.extract_strided_slice %6 {offsets = [0, 0, 0], sizes = [1, 1, 32], strides = [1, 1, 1]} : vector<1x8x32xf32> to vector<1x1x32xf32>
    %24 = vector.shape_cast %23 : vector<1x1x32xf32> to vector<1x32xf32>
    %25 = vector.shape_cast %24 : vector<1x32xf32> to vector<1x1x32xf32>
    %26 = vector.broadcast %15 : vector<1x3x1xf32> to vector<1x3x32xf32>
    %27 = vector.broadcast %25 : vector<1x1x32xf32> to vector<1x3x32xf32>
    %28 = arith.mulf %26, %27 : vector<1x3x32xf32>
    %29 = arith.addf %22, %28 : vector<1x3x32xf32>
    %c1_22 = arith.constant 1 : index
    %c0_23 = arith.constant 0 : index
    %c0_24 = arith.constant 0 : index
    %c0_25 = arith.constant 0 : index
    %30 = vector.load %arg3[%c1_22, %c0_23, %c0_24, %c0_25] : memref<9x1x3x32xf32, #tpu.memory_space<vmem>>, vector<1x1x3x32xf32>
    %31 = vector.shape_cast %30 : vector<1x1x3x32xf32> to vector<1x3x32xf32>
    %32 = vector.shape_cast %29 : vector<1x3x32xf32> to vector<1x1x3x32xf32>
    tpu.vector_store %arg3[%c1_22, %c0_23, %c0_24, %c0_25], %32 {strides = array<i32>} : memref<9x1x3x32xf32, #tpu.memory_space<vmem>>, vector<1x1x3x32xf32>,
    %c0_26 = arith.constant 0 : index
    %c0_27 = arith.constant 0 : index
    %c2 = arith.constant 2 : index
    %c0_28 = arith.constant 0 : index
    %33 = vector.load %arg1[%c0_26, %c0_27, %c2, %c0_28] : memref<1x3x9x32xf32, #tpu.memory_space<vmem>>, vector<1x3x1x32xf32>
    %34 = vector.shape_cast %33 : vector<1x3x1x32xf32> to vector<1x3x32xf32>
    %35 = vector.extract_strided_slice %6 {offsets = [0, 1, 0], sizes = [1, 1, 32], strides = [1, 1, 1]} : vector<1x8x32xf32> to vector<1x1x32xf32>
    %36 = vector.shape_cast %35 : vector<1x1x32xf32> to vector<1x32xf32>
    %37 = vector.shape_cast %36 : vector<1x32xf32> to vector<1x1x32xf32>
    %38 = vector.broadcast %15 : vector<1x3x1xf32> to vector<1x3x32xf32>
    %39 = vector.broadcast %37 : vector<1x1x32xf32> to vector<1x3x32xf32>
    %40 = arith.mulf %38, %39 : vector<1x3x32xf32>
    %41 = arith.addf %34, %40 : vector<1x3x32xf32>
    %c2_29 = arith.constant 2 : index
    %c0_30 = arith.constant 0 : index
    %c0_31 = arith.constant 0 : index
    %c0_32 = arith.constant 0 : index
    %42 = vector.load %arg3[%c2_29, %c0_30, %c0_31, %c0_32] : memref<9x1x3x32xf32, #tpu.memory_space<vmem>>, vector<1x1x3x32xf32>
    %43 = vector.shape_cast %42 : vector<1x1x3x32xf32> to vector<1x3x32xf32>
    %44 = vector.shape_cast %41 : vector<1x3x32xf32> to vector<1x1x3x32xf32>
    tpu.vector_store %arg3[%c2_29, %c0_30, %c0_31, %c0_32], %44 {strides = array<i32>} : memref<9x1x3x32xf32, #tpu.memory_space<vmem>>, vector<1x1x3x32xf32>,
    %c0_33 = arith.constant 0 : index
    %c0_34 = arith.constant 0 : index
    %c3 = arith.constant 3 : index
    %c0_35 = arith.constant 0 : index
    %45 = vector.load %arg1[%c0_33, %c0_34, %c3, %c0_35] : memref<1x3x9x32xf32, #tpu.memory_space<vmem>>, vector<1x3x1x32xf32>
    %46 = vector.shape_cast %45 : vector<1x3x1x32xf32> to vector<1x3x32xf32>
    %47 = vector.extract_strided_slice %6 {offsets = [0, 2, 0], sizes = [1, 1, 32], strides = [1, 1, 1]} : vector<1x8x32xf32> to vector<1x1x32xf32>
    %48 = vector.shape_cast %47 : vector<1x1x32xf32> to vector<1x32xf32>
    %49 = vector.shape_cast %48 : vector<1x32xf32> to vector<1x1x32xf32>
    %50 = vector.broadcast %15 : vector<1x3x1xf32> to vector<1x3x32xf32>
    %51 = vector.broadcast %49 : vector<1x1x32xf32> to vector<1x3x32xf32>
    %52 = arith.mulf %50, %51 : vector<1x3x32xf32>
    %53 = arith.addf %46, %52 : vector<1x3x32xf32>
    %c3_36 = arith.constant 3 : index
    %c0_37 = arith.constant 0 : index
    %c0_38 = arith.constant 0 : index
    %c0_39 = arith.constant 0 : index
    %54 = vector.load %arg3[%c3_36, %c0_37, %c0_38, %c0_39] : memref<9x1x3x32xf32, #tpu.memory_space<vmem>>, vector<1x1x3x32xf32>
    %55 = vector.shape_cast %54 : vector<1x1x3x32xf32> to vector<1x3x32xf32>
    %56 = vector.shape_cast %53 : vector<1x3x32xf32> to vector<1x1x3x32xf32>
    tpu.vector_store %arg3[%c3_36, %c0_37, %c0_38, %c0_39], %56 {strides = array<i32>} : memref<9x1x3x32xf32, #tpu.memory_space<vmem>>, vector<1x1x3x32xf32>,
    %c0_40 = arith.constant 0 : index
    %c0_41 = arith.constant 0 : index
    %c4 = arith.constant 4 : index
    %c0_42 = arith.constant 0 : index
    %57 = vector.load %arg1[%c0_40, %c0_41, %c4, %c0_42] : memref<1x3x9x32xf32, #tpu.memory_space<vmem>>, vector<1x3x1x32xf32>
    %58 = vector.shape_cast %57 : vector<1x3x1x32xf32> to vector<1x3x32xf32>
    %59 = vector.extract_strided_slice %6 {offsets = [0, 3, 0], sizes = [1, 1, 32], strides = [1, 1, 1]} : vector<1x8x32xf32> to vector<1x1x32xf32>
    %60 = vector.shape_cast %59 : vector<1x1x32xf32> to vector<1x32xf32>
    %61 = vector.shape_cast %60 : vector<1x32xf32> to vector<1x1x32xf32>
    %62 = vector.broadcast %15 : vector<1x3x1xf32> to vector<1x3x32xf32>
    %63 = vector.broadcast %61 : vector<1x1x32xf32> to vector<1x3x32xf32>
    %64 = arith.mulf %62, %63 : vector<1x3x32xf32>
    %65 = arith.addf %58, %64 : vector<1x3x32xf32>
    %c4_43 = arith.constant 4 : index
    %c0_44 = arith.constant 0 : index
    %c0_45 = arith.constant 0 : index
    %c0_46 = arith.constant 0 : index
    %66 = vector.load %arg3[%c4_43, %c0_44, %c0_45, %c0_46] : memref<9x1x3x32xf32, #tpu.memory_space<vmem>>, vector<1x1x3x32xf32>
    %67 = vector.shape_cast %66 : vector<1x1x3x32xf32> to vector<1x3x32xf32>
    %68 = vector.shape_cast %65 : vector<1x3x32xf32> to vector<1x1x3x32xf32>
    tpu.vector_store %arg3[%c4_43, %c0_44, %c0_45, %c0_46], %68 {strides = array<i32>} : memref<9x1x3x32xf32, #tpu.memory_space<vmem>>, vector<1x1x3x32xf32>,
    %c0_47 = arith.constant 0 : index
    %c0_48 = arith.constant 0 : index
    %c5 = arith.constant 5 : index
    %c0_49 = arith.constant 0 : index
    %69 = vector.load %arg1[%c0_47, %c0_48, %c5, %c0_49] : memref<1x3x9x32xf32, #tpu.memory_space<vmem>>, vector<1x3x1x32xf32>
    %70 = vector.shape_cast %69 : vector<1x3x1x32xf32> to vector<1x3x32xf32>
    %71 = vector.extract_strided_slice %6 {offsets = [0, 4, 0], sizes = [1, 1, 32], strides = [1, 1, 1]} : vector<1x8x32xf32> to vector<1x1x32xf32>
    %72 = vector.shape_cast %71 : vector<1x1x32xf32> to vector<1x32xf32>
    %73 = vector.shape_cast %72 : vector<1x32xf32> to vector<1x1x32xf32>
    %74 = vector.broadcast %15 : vector<1x3x1xf32> to vector<1x3x32xf32>
    %75 = vector.broadcast %73 : vector<1x1x32xf32> to vector<1x3x32xf32>
    %76 = arith.mulf %74, %75 : vector<1x3x32xf32>
    %77 = arith.addf %70, %76 : vector<1x3x32xf32>
    %c5_50 = arith.constant 5 : index
    %c0_51 = arith.constant 0 : index
    %c0_52 = arith.constant 0 : index
    %c0_53 = arith.constant 0 : index
    %78 = vector.load %arg3[%c5_50, %c0_51, %c0_52, %c0_53] : memref<9x1x3x32xf32, #tpu.memory_space<vmem>>, vector<1x1x3x32xf32>
    %79 = vector.shape_cast %78 : vector<1x1x3x32xf32> to vector<1x3x32xf32>
    %80 = vector.shape_cast %77 : vector<1x3x32xf32> to vector<1x1x3x32xf32>
    tpu.vector_store %arg3[%c5_50, %c0_51, %c0_52, %c0_53], %80 {strides = array<i32>} : memref<9x1x3x32xf32, #tpu.memory_space<vmem>>, vector<1x1x3x32xf32>,
    %c0_54 = arith.constant 0 : index
    %c0_55 = arith.constant 0 : index
    %c6 = arith.constant 6 : index
    %c0_56 = arith.constant 0 : index
    %81 = vector.load %arg1[%c0_54, %c0_55, %c6, %c0_56] : memref<1x3x9x32xf32, #tpu.memory_space<vmem>>, vector<1x3x1x32xf32>
    %82 = vector.shape_cast %81 : vector<1x3x1x32xf32> to vector<1x3x32xf32>
    %83 = vector.extract_strided_slice %6 {offsets = [0, 5, 0], sizes = [1, 1, 32], strides = [1, 1, 1]} : vector<1x8x32xf32> to vector<1x1x32xf32>
    %84 = vector.shape_cast %83 : vector<1x1x32xf32> to vector<1x32xf32>
    %85 = vector.shape_cast %84 : vector<1x32xf32> to vector<1x1x32xf32>
    %86 = vector.broadcast %15 : vector<1x3x1xf32> to vector<1x3x32xf32>
    %87 = vector.broadcast %85 : vector<1x1x32xf32> to vector<1x3x32xf32>
    %88 = arith.mulf %86, %87 : vector<1x3x32xf32>
    %89 = arith.addf %82, %88 : vector<1x3x32xf32>
    %c6_57 = arith.constant 6 : index
    %c0_58 = arith.constant 0 : index
    %c0_59 = arith.constant 0 : index
    %c0_60 = arith.constant 0 : index
    %90 = vector.load %arg3[%c6_57, %c0_58, %c0_59, %c0_60] : memref<9x1x3x32xf32, #tpu.memory_space<vmem>>, vector<1x1x3x32xf32>
    %91 = vector.shape_cast %90 : vector<1x1x3x32xf32> to vector<1x3x32xf32>
    %92 = vector.shape_cast %89 : vector<1x3x32xf32> to vector<1x1x3x32xf32>
    tpu.vector_store %arg3[%c6_57, %c0_58, %c0_59, %c0_60], %92 {strides = array<i32>} : memref<9x1x3x32xf32, #tpu.memory_space<vmem>>, vector<1x1x3x32xf32>,
    %c0_61 = arith.constant 0 : index
    %c0_62 = arith.constant 0 : index
    %c7 = arith.constant 7 : index
    %c0_63 = arith.constant 0 : index
    %93 = vector.load %arg1[%c0_61, %c0_62, %c7, %c0_63] : memref<1x3x9x32xf32, #tpu.memory_space<vmem>>, vector<1x3x1x32xf32>
    %94 = vector.shape_cast %93 : vector<1x3x1x32xf32> to vector<1x3x32xf32>
    %95 = vector.extract_strided_slice %6 {offsets = [0, 6, 0], sizes = [1, 1, 32], strides = [1, 1, 1]} : vector<1x8x32xf32> to vector<1x1x32xf32>
    %96 = vector.shape_cast %95 : vector<1x1x32xf32> to vector<1x32xf32>
    %97 = vector.shape_cast %96 : vector<1x32xf32> to vector<1x1x32xf32>
    %98 = vector.broadcast %15 : vector<1x3x1xf32> to vector<1x3x32xf32>
    %99 = vector.broadcast %97 : vector<1x1x32xf32> to vector<1x3x32xf32>
    %100 = arith.mulf %98, %99 : vector<1x3x32xf32>
    %101 = arith.addf %94, %100 : vector<1x3x32xf32>
    %c7_64 = arith.constant 7 : index
    %c0_65 = arith.constant 0 : index
    %c0_66 = arith.constant 0 : index
    %c0_67 = arith.constant 0 : index
    %102 = vector.load %arg3[%c7_64, %c0_65, %c0_66, %c0_67] : memref<9x1x3x32xf32, #tpu.memory_space<vmem>>, vector<1x1x3x32xf32>
    %103 = vector.shape_cast %102 : vector<1x1x3x32xf32> to vector<1x3x32xf32>
    %104 = vector.shape_cast %101 : vector<1x3x32xf32> to vector<1x1x3x32xf32>
    tpu.vector_store %arg3[%c7_64, %c0_65, %c0_66, %c0_67], %104 {strides = array<i32>} : memref<9x1x3x32xf32, #tpu.memory_space<vmem>>, vector<1x1x3x32xf32>,
    %c0_68 = arith.constant 0 : index
    %c0_69 = arith.constant 0 : index
    %c8 = arith.constant 8 : index
    %c0_70 = arith.constant 0 : index
    %105 = vector.load %arg1[%c0_68, %c0_69, %c8, %c0_70] : memref<1x3x9x32xf32, #tpu.memory_space<vmem>>, vector<1x3x1x32xf32>
    %106 = vector.shape_cast %105 : vector<1x3x1x32xf32> to vector<1x3x32xf32>
    %107 = vector.extract_strided_slice %6 {offsets = [0, 7, 0], sizes = [1, 1, 32], strides = [1, 1, 1]} : vector<1x8x32xf32> to vector<1x1x32xf32>
    %108 = vector.shape_cast %107 : vector<1x1x32xf32> to vector<1x32xf32>
    %109 = vector.shape_cast %108 : vector<1x32xf32> to vector<1x1x32xf32>
    %110 = vector.broadcast %15 : vector<1x3x1xf32> to vector<1x3x32xf32>
    %111 = vector.broadcast %109 : vector<1x1x32xf32> to vector<1x3x32xf32>
    %112 = arith.mulf %110, %111 : vector<1x3x32xf32>
    %113 = arith.addf %106, %112 : vector<1x3x32xf32>
    %c8_71 = arith.constant 8 : index
    %c0_72 = arith.constant 0 : index
    %c0_73 = arith.constant 0 : index
    %c0_74 = arith.constant 0 : index
    %114 = vector.load %arg3[%c8_71, %c0_72, %c0_73, %c0_74] : memref<9x1x3x32xf32, #tpu.memory_space<vmem>>, vector<1x1x3x32xf32>
    %115 = vector.shape_cast %114 : vector<1x1x3x32xf32> to vector<1x3x32xf32>
    %116 = vector.shape_cast %113 : vector<1x3x32xf32> to vector<1x1x3x32xf32>
    tpu.vector_store %arg3[%c8_71, %c0_72, %c0_73, %c0_74], %116 {strides = array<i32>} : memref<9x1x3x32xf32, #tpu.memory_space<vmem>>, vector<1x1x3x32xf32>,
    return
  }
  func.func @transform_0(%arg0: i32) -> (i32, i32, i32, i32) {
    %c0_i32 = arith.constant 0 : i32
    %c0_i32_0 = arith.constant 0 : i32
    %c0_i32_1 = arith.constant 0 : i32
    %c0_i32_2 = arith.constant 0 : i32
    return %arg0, %c0_i32, %c0_i32_0, %c0_i32_1 : i32, i32, i32, i32
  }
  func.func @transform_1(%arg0: i32) -> (i32, i32, i32, i32) {
    %c0_i32 = arith.constant 0 : i32
    %c0_i32_0 = arith.constant 0 : i32
    %c0_i32_1 = arith.constant 0 : i32
    %c0_i32_2 = arith.constant 0 : i32
    return %arg0, %c0_i32, %c0_i32_0, %c0_i32_1 : i32, i32, i32, i32
  }
  func.func @transform_2(%arg0: i32) -> (i32, i32, i32, i32) {
    %c0_i32 = arith.constant 0 : i32
    %c0_i32_0 = arith.constant 0 : i32
    %c0_i32_1 = arith.constant 0 : i32
    %c0_i32_2 = arith.constant 0 : i32
    return %c0_i32, %arg0, %c0_i32_0, %c0_i32_1 : i32, i32, i32, i32
  }
  func.func @transform_3(%arg0: i32) -> (i32, i32, i32) {
    %c0_i32 = arith.constant 0 : i32
    %c0_i32_0 = arith.constant 0 : i32
    %c0_i32_1 = arith.constant 0 : i32
    return %arg0, %c0_i32, %c0_i32_0 : i32, i32, i32
  }
}

</mosaic_0001>

<bundles_post_ra>
// kernel: tpu_custom_call.1
= control target key start
LH: loop header
LB: loop body
LE: loop exit
PB: predicated region body
PF: predicated region fallthrough
CT: control target
= control target key end

     0   :  { %9 = vsyncpa [#allocation4], 0  ;;  %s993_s0 = inlined_call_operand.vmem [shape: f32[4,3,9,32], index: 0, kind: input, shape index: {}]   ;;  %s994_s1 = inlined_call_operand.vmem [shape: f32[4,2,8,32], index: 1, kind: input, shape index: {}]   ;;  %s995_s2 = inlined_call_operand.vmem [shape: f32[9,4,3,32], index: 2, kind: output, shape index: {0}]   ;;  %s996_s3 = inlined_call_operand.hbm [shape: f32[4,8,32], index: 3, kind: output, shape index: {1}]  }
   0x1   :  { %11 = vsyncpa [#allocation4 + $0x1], 0  ;;  %s783_s12 = smov 0   ;;  %s785_s13 = smov 0  }
   0x2   :  { %s787_s14 = smov 0   ;;  %s789_s15 = smov 0  }
   0x3 LB: > { %s804_s16 = sadd.s32 4294967295, %s760_s15   ;;  %s634_s17 = sadd.s32 4294967294, %s760_s15   ;;  %s760_s15 = sphi %s789_s15, %s1002_s15   ;;  %s756_s14 = sphi %s787_s14, %s1001_s14   ;;  %s752_s13 = sphi %s785_s13, %s1000_s13   ;;  %s748_s12 = sphi %s783_s12, %s999_s12  }
   0x4   : > { %s808_s18 = sadd.s32 1, %s760_s15   ;;  %s76_s19 = sadd.s32 1, %s756_s14 }
   0x5   : > { %s73_s20 = ssub.s32 %s760_s15, %s808_s18  ;;  %p86_p0 = scmp.ne.s32.totalorder %s756_s14, %s752_s13 }
   0x6   : > { %p74_p1 = scmp.eq.s32.totalorder %s73_s20, 0  ;;  %p87_p2 = scmp.eq.s32.totalorder %s804_s16, 3 }
   0x7   : > { %p118_p3 = scmp.ne.s32.totalorder %s752_s13, %s748_s12  ;;  %p119_p4 = scmp.eq.s32.totalorder %s634_s17, 3 }
   0x8   : > { %s819_s21 = scalar_select %p74_p1, %s756_s14, %s76_s19  }
   0x9   : > { %p821_p5 = por %p87_p2, %p86_p0  ;;  %p825_p6 = por %p119_p4, %p118_p3 }
   0xa   : > { %p637_p7 = scmp.ge.s32.totalorder %s760_s15, 1  ;;  %p153_p8 = scmp.lt.s32.totalorder %s760_s15, 5 }
   0xc   : > { %p154_p9 = pnand %p637_p7, %p153_p8 }
   0xd   : > { %p186_p10 = scmp.lt.s32.totalorder (!%p154_p9), %s804_s16, 3  ;;  %s833_s24 = sand.u32 (!%p154_p9), 1, %s752_s13  }
   0xe   : > { %157 = sbr.rel (%p154_p9) target bundleno = 87 (0x57), region = 28  ;;  %s638_s29 = sshll.u32 (!%p154_p9), %s833_s24, 3 }
   0xf   : > { %s659_s26 = smul.u32 (!%p154_p9), 36, %s833_s24  ;;  %s853_s9 = scalar_lea.vmem (!%p154_p9), [#allocation3], %s638_s29 }
  0x10   : > { %s444_s11 = scalar_lea.sflag (!%p154_p9), [#allocation4], %s833_s24 }
  0x11   : > { %s860_s10 = scalar_lea.vmem (!%p154_p9), [#allocation2], %s659_s26 }
  0x13   : > { %v203_v0 = vlaneseq  ;;  %s187_s25 = scalar_select %p186_p10, %s804_s16, 3  ;;  %vm201_vm0 = vcmask 261120   ;;  %vm215_vm1 = vcmask 1041409   ;;  %vm218_vm2 = vcmask 1042434  }
  0x14   : > { %vm221_vm4 = vcmask 256000   ;;  %s654_s17 = sshll.u32 (%p821_p5), %s804_s16, 2 }
  0x15   : > { %v204_v1 = vshrl.u32 %v203_v0, 7  ;;  %s660_s27 = smul.u32 48, %s187_s25  ;;  %s658_s28 = sshll.u32 %s187_s25, 4 }
  0x16   : > { %s195_s5 = scalar_lea.vmem %s994_s1, %s658_s28  ;;  %s452_s25 = scalar_lea.vmem (%p821_p5), %s995_s2, %s654_s17 }
  0x17   : > { %vm205_vm3 = vcmp.lt.s32.totalorder %v204_v1, 5  ;;  %v643_v2 = vcvt.s32.f32 %v204_v1  ;;  %v228_v3 = vsub.s32 0, %v204_v1  ;;  %s844_s8 = scalar_lea.vmem %s993_s0, %s660_s27  ;;  %v196_v4 = vld [vmem:[%s195_s5] sm:$0xff]  ;;  %v642_v5 = vld [vmem:[%s195_s5 + $0x8] sm:$0xff]  ;;  %v255_v6 = vsub.s32 1, %v204_v1 }
  0x18   : > { %v282_v7 = vsub.s32 2, %v204_v1  ;;  %v309_v8 = vsub.s32 3, %v204_v1  ;;  %v336_v9 = vsub.s32 4, %v204_v1  ;;  %v199_v10 = vadd.f32 %v642_v5, %v196_v4  ;;  %v208_v11 = vld [vmem:[%s844_s8] sm:$0x1] }
  0x19   : > { %v209_v12 = vld [vmem:[%s844_s8 + $0x10] sm:$0x1]  ;;  %v210_v13 = vld [vmem:[%s844_s8 + $0x20] sm:$0x1]  ;;  %v363_v16 = vsub.s32 5, %v204_v1  ;;  %v390_v17 = vsub.s32 6, %v204_v1 }
  0x1a   : > { %v214_v14 = vrot.slane %v209_v12, 7  ;;  %v217_v15 = vrot.slane %v210_v13, 6  ;;  %v200_v18 = vmul.f32 0.5, %v199_v10  ;;  %v417_v19 = vsub.s32 7, %v204_v1  ;;  %v223_v26 = vld [vmem:[%s844_s8 + $0x1] sm:$0x1] }
  0x1b   : > { %v851_v21 = vsel %vm205_vm3, %v643_v2, 0.0  ;;  %v224_v27 = vld [vmem:[%s844_s8 + $0x11] sm:$0x1]  ;;  %v225_v32 = vld [vmem:[%s844_s8 + $0x21] sm:$0x1] }
  0x1c   : > { %v216_v20 = vsel %vm215_vm1, %v214_v14, %v208_v11  ;;  %202 = vst.msk [vmem:[%s853_s9] sm:$0xff] %vm201_vm0, %v200_v18  ;;  %v229_v23 = vrot.slane %v200_v18, %v228_v3  ;;  %v256_v24 = vrot.slane %v200_v18, %v255_v6  ;;  %v283_v25 = vrot.slane %v200_v18, %v282_v7  ;;  %v250_v34 = vld [vmem:[%s844_s8 + $0x2] sm:$0x1]  ;;  %v251_v35 = vld [vmem:[%s844_s8 + $0x12] sm:$0x1] }
  0x1d   : > { %v219_v22 = vsel %vm218_vm2, %v217_v15, %v216_v20  ;;  %v310_v28 = vrot.slane %v200_v18, %v309_v8  ;;  %v337_v29 = vrot.slane %v200_v18, %v336_v9  ;;  %v364_v30 = vrot.slane %v200_v18, %v363_v16  ;;  %v252_v39 = vld [vmem:[%s844_s8 + $0x22] sm:$0x1]  ;;  %v277_v40 = vld [vmem:[%s844_s8 + $0x3] sm:$0x1]  ;;  %v278_v41 = vld [vmem:[%s844_s8 + $0x13] sm:$0x1] }
  0x1e   : > { %222 = vst.msk [vmem:[%s860_s10] sm:$0x7] %vm221_vm4, %v219_v22  ;;  %v391_v31 = vrot.slane %v200_v18, %v390_v17  ;;  %v230_v33 = vmul.f32 %v851_v21, %v229_v23  ;;  %v257_v36 = vmul.f32 %v851_v21, %v256_v24  ;;  %v284_v37 = vmul.f32 %v851_v21, %v283_v25  ;;  %v279_v50 = vld [vmem:[%s844_s8 + $0x23] sm:$0x1]  ;;  %v304_v59 = vld [vmem:[%s844_s8 + $0x4] sm:$0x1] }
  0x1f   : > { %v872_v38 = vrot.slane %v200_v18, %v417_v19  ;;  %v311_v42 = vmul.f32 %v851_v21, %v310_v28  ;;  %v338_v43 = vmul.f32 %v851_v21, %v337_v29  ;;  %v880_v44 = vmul.f32 %v851_v21, %v364_v30  ;;  %v305_v63 = vld [vmem:[%s844_s8 + $0x14] sm:$0x1]  ;;  %v306_v0 = vld [vmem:[%s844_s8 + $0x24] sm:$0x1]  ;;  %v331_v14 = vld [vmem:[%s844_s8 + $0x5] sm:$0x1] }
  0x20   : > { %v883_v45 = vmul.f32 %v851_v21, %v391_v31  ;;  %v232_v46 = vrot.slane %v230_v33, 1  ;;  %v233_v47 = vrot.slane %v230_v33, 2  ;;  %v237_v48 = vadd.f32 %v230_v33, %v223_v26  ;;  %v332_v15 = vld [vmem:[%s844_s8 + $0x15] sm:$0x1]  ;;  %v333_v16 = vld [vmem:[%s844_s8 + $0x25] sm:$0x1] }
  0x21   : > { %v259_v49 = vrot.slane %v257_v36, 1  ;;  %v260_v51 = vrot.slane %v257_v36, 2  ;;  %v264_v52 = vadd.f32 %v257_v36, %v250_v34  ;;  %v286_v53 = vrot.slane %v284_v37, 1  ;;  %v358_v22 = vld [vmem:[%s844_s8 + $0x6] sm:$0x1] }
  0x22   : > { %v287_v54 = vrot.slane %v284_v37, 2  ;;  %v238_v55 = vadd.f32 %v232_v46, %v224_v27  ;;  %v239_v56 = vadd.f32 %v233_v47, %v225_v32  ;;  %v291_v58 = vadd.f32 %v284_v37, %v277_v40  ;;  %v359_v23 = vld [vmem:[%s844_s8 + $0x16] sm:$0x1]  ;;  %v360_v28 = vld [vmem:[%s844_s8 + $0x26] sm:$0x1] }
  0x23   : > { %v265_v57 = vadd.f32 %v259_v49, %v251_v35  ;;  %v266_v60 = vadd.f32 %v260_v51, %v252_v39  ;;  %v292_v61 = vadd.f32 %v286_v53, %v278_v41  ;;  %v313_v1 = vrot.slane %v311_v42, 1  ;;  %v385_v33 = vld [vmem:[%s844_s8 + $0x7] sm:$0x1]  ;;  %v386_v34 = vld [vmem:[%s844_s8 + $0x17] sm:$0x1] }
  0x24   : > { %v293_v62 = vadd.f32 %v287_v54, %v279_v50  ;;  %v243_v2 = vrot.slane %v238_v55, 7  ;;  %v245_v3 = vrot.slane %v239_v56, 6  ;;  %v314_v5 = vrot.slane %v311_v42, 2  ;;  %v387_v46 = vld [vmem:[%s844_s8 + $0x27] sm:$0x1] }
  0x25   : > { %v270_v4 = vrot.slane %v265_v57, 7  ;;  %v272_v6 = vrot.slane %v266_v60, 6  ;;  %v297_v7 = vrot.slane %v292_v61, 7  ;;  %v318_v9 = vadd.f32 %v311_v42, %v304_v59  ;;  %v412_v53 = vld [vmem:[%s844_s8 + $0x8] sm:$0x1] }
  0x26   : > { %v299_v8 = vrot.slane %v293_v62, 6  ;;  %v244_v10 = vsel %vm215_vm1, %v243_v2, %v237_v48  ;;  %v319_v12 = vadd.f32 %v313_v1, %v305_v63  ;;  %v320_v13 = vadd.f32 %v314_v5, %v306_v0  ;;  %v414_v59 = vld [vmem:[%s844_s8 + $0x28] sm:$0x1] }
  0x27   : > { %v271_v11 = vsel %vm215_vm1, %v270_v4, %v264_v52  ;;  %v246_v17 = vsel %vm218_vm2, %v245_v3, %v244_v10  ;;  %v298_v19 = vsel %vm215_vm1, %v297_v7, %v291_v58  ;;  %v340_v20 = vrot.slane %v338_v43, 1  ;;  %v413_v58 = vld [vmem:[%s844_s8 + $0x18] sm:$0x1]  ;;  %v469_v7 = vld [vmem:[%s860_s10] sm:$0xf] (%p821_p5) }
  0x28   : > { %v273_v18 = vsel %vm218_vm2, %v272_v6, %v271_v11  ;;  %645 = vst.msk [vmem:[%s860_s10 + $0x4] sm:$0x7] %vm221_vm4, %v246_v17  ;;  %v300_v24 = vsel %vm218_vm2, %v299_v8, %v298_v19  ;;  %v324_v25 = vrot.slane %v319_v12, 7  ;;  %v326_v26 = vrot.slane %v320_v13, 6  ;;  %470 = vst [vmem:[%s452_s25] sm:$0xf] (%p821_p5), %v469_v7 }
  0x29   : > { %646 = vst.msk [vmem:[%s860_s10 + $0x8] sm:$0x7] %vm221_vm4, %v273_v18  ;;  %v341_v27 = vrot.slane %v338_v43, 2  ;;  %647 = vst.msk [vmem:[%s860_s10 + $0xc] sm:$0x7] %vm221_vm4, %v300_v24  ;;  %v345_v29 = vadd.f32 %v338_v43, %v331_v14  ;;  %v346_v30 = vadd.f32 %v340_v20, %v332_v15  ;;  %v367_v31 = vrot.slane %v880_v44, 1 }
  0x2a   : > { %v368_v32 = vrot.slane %v880_v44, 2  ;;  %v325_v35 = vsel %vm215_vm1, %v324_v25, %v318_v9  ;;  %v372_v37 = vadd.f32 %v880_v44, %v358_v22  ;;  %v394_v39 = vrot.slane %v883_v45, 1 }
  0x2b   : > { %v347_v36 = vadd.f32 %v341_v27, %v333_v16  ;;  %v327_v40 = vsel %vm218_vm2, %v326_v26, %v325_v35  ;;  %v351_v41 = vrot.slane %v346_v30, 7  ;;  %v373_v42 = vadd.f32 %v367_v31, %v359_v23 }
  0x2c   : > { %v374_v43 = vadd.f32 %v368_v32, %v360_v28  ;;  %648 = vst.msk [vmem:[%s860_s10 + $0x10] sm:$0x7] %vm221_vm4, %v327_v40  ;;  %v395_v48 = vrot.slane %v883_v45, 2  ;;  %v399_v49 = vadd.f32 %v883_v45, %v385_v33  ;;  %v400_v50 = vadd.f32 %v394_v39, %v386_v34 }
  0x2d   : > { %v353_v47 = vrot.slane %v347_v36, 6  ;;  %v352_v44 = vsel %vm215_vm1, %v351_v41, %v345_v29  ;;  %v378_v51 = vrot.slane %v373_v42, 7  ;;  %v419_v54 = vmul.f32 %v851_v21, %v872_v38 }
  0x2e   : > { %v380_v52 = vrot.slane %v374_v43, 6  ;;  %v401_v56 = vadd.f32 %v395_v48, %v387_v46  ;;  %v405_v57 = vrot.slane %v400_v50, 7 }
  0x2f   : > { %v354_v55 = vsel %vm218_vm2, %v353_v47, %v352_v44  ;;  %v379_v45 = vsel %vm215_vm1, %v378_v51, %v372_v37  ;;  %v421_v60 = vrot.slane %v419_v54, 1  ;;  %v422_v61 = vrot.slane %v419_v54, 2  ;;  %v471_v8 = vld [vmem:[%s860_s10 + $0x4] sm:$0xf] (%p821_p5) }
  0x30   : > { %649 = vst.msk [vmem:[%s860_s10 + $0x14] sm:$0x7] %vm221_vm4, %v354_v55  ;;  %v381_v62 = vsel %vm218_vm2, %v380_v52, %v379_v45  ;;  %v406_v63 = vsel %vm215_vm1, %v405_v57, %v399_v49  ;;  %v407_v21 = vrot.slane %v401_v56, 6  ;;  %v426_v38 = vadd.f32 %v419_v54, %v412_v53  ;;  %v473_v9 = vld [vmem:[%s860_s10 + $0x8] sm:$0xf] (%p821_p5) }
  0x31   : > { %650 = vst.msk [vmem:[%s860_s10 + $0x18] sm:$0x7] %vm221_vm4, %v381_v62  ;;  %v427_v0 = vadd.f32 %v421_v60, %v413_v58  ;;  %v428_v1 = vadd.f32 %v422_v61, %v414_v59  ;;  %v475_v10 = vld [vmem:[%s860_s10 + $0xc] sm:$0xf] (%p821_p5)  ;;  %472 = vst [vmem:[%s452_s25 + $0x10] sm:$0xf] (%p821_p5), %v471_v8 }
  0x32   : > { %v408_v2 = vsel %vm218_vm2, %v407_v21, %v406_v63  ;;  %474 = vst [vmem:[%s452_s25 + $0x20] sm:$0xf] (%p821_p5), %v473_v9  ;;  %476 = vst [vmem:[%s452_s25 + $0x30] sm:$0xf] (%p821_p5), %v475_v10 }
  0x33   : > { %651 = vst.msk [vmem:[%s860_s10 + $0x1c] sm:$0x7] %vm221_vm4, %v408_v2  ;;  %v432_v3 = vrot.slane %v427_v0, 7  ;;  %v434_v4 = vrot.slane %v428_v1, 6  ;;  %450 = sbr.rel (!%p821_p5) target bundleno = 64 (0x40), region = 32 }
  0x34   : > { %v477_v11 = vld [vmem:[%s860_s10 + $0x10] sm:$0xf] (%p821_p5) }
  0x35   : > { %v433_v5 = vsel %vm215_vm1, %v432_v3, %v426_v38  ;;  %478 = vst [vmem:[%s452_s25 + $0x40] sm:$0xf] (%p821_p5), %v477_v11 }
  0x36   : > { %v435_v6 = vsel %vm218_vm2, %v434_v4, %v433_v5 }
  0x37   : > { %652 = vst.msk [vmem:[%s860_s10 + $0x20] sm:$0x7] %vm221_vm4, %v435_v6  ;;  %v479_v12 = vld [vmem:[%s860_s10 + $0x14] sm:$0xf] (%p821_p5) }
  0x38   : > { %v481_v13 = vld [vmem:[%s860_s10 + $0x18] sm:$0xf]  ;;  %480 = vst [vmem:[%s452_s25 + $0x50] sm:$0xf] %v479_v12 }
  0x39   : > { %482 = vst [vmem:[%s452_s25 + $0x60] sm:$0xf] %v481_v13 }
  0x3a   : > { %v483_v14 = vld [vmem:[%s860_s10 + $0x1c] sm:$0xf] }
  0x3b   : > { %484 = vst [vmem:[%s452_s25 + $0x70] sm:$0xf] %v483_v14 }
  0x3e   : > { %v485_v15 = vld [vmem:[%s860_s10 + $0x20] sm:$0xf] }
  0x3f   : > { %486 = vst [vmem:[%s452_s25 + $0x80] sm:$0xf] %v485_v15 }
  0x40 PF: > { %s655_s26 = sshll.u32 %s804_s16, 7  ;;  %s535_s27 = sshll.u32 %s853_s9, 4  ;;  %s536_s27 = int_to_ptr.vmem [resolvable:$true] %s535_s27 }
  0x41   : > { %s533_s30 = scalar_lea.hbm %s996_s3, %s655_s26  ;;  %s700_s4 = scalar_lea.vmem %s536_s27, 128 }
  0x42   : > { %p701_p11 = scmp.ne.s32.totalorder %s536_s27, %s700_s4  ;;  %s762_s5 = smov [#allocation3]  }
  0x43   : > { %s704_s6 = sshll.u32 %s762_s5, 4  ;;  %s705_s6 = int_to_ptr.vmem [resolvable:$false] %s704_s6 }
  0x44   : > { %p702_p12 = pnand %p701_p11, %p821_p5  ;;  %s706_s7 = scalar_lea.vmem %s705_s6, 256 }
  0x45   : > { %p707_p0 = scmp.lt.s32.totalorder %s536_s27, %s705_s6  ;;  %p708_p1 = scmp.lt.s32.totalorder %s706_s7, %s700_s4 }
  0x46   : > { %p703_p13 = pneg %p702_p12 }
  0x47   : > { %p709_p2 = por %p708_p1, %p707_p0 }
  0x49   : > { %p710_p3 = pnand %p709_p2, %p703_p13 }
  0x4b   : > { %713 = shalt.err (!%p710_p3)
}
  0x4c   : > { %s714_s16 = scalar_lea.hbm %s533_s30, 128  ;;  %s718_s10 = scalar_lea.hbm %s996_s3, 512 }
  0x4d   : > { %p715_p4 = scmp.ne.s32.totalorder %s533_s30, %s714_s16  ;;  %p719_p9 = scmp.lt.s32.totalorder %s533_s30, %s996_s3 }
  0x4e   : > { %p720_p10 = scmp.lt.s32.totalorder %s718_s10, %s714_s16 }
  0x4f   : > { %p716_p7 = pnand %p715_p4, %p821_p5 }
  0x50   : > { %p721_p11 = por %p720_p10, %p719_p9 }
  0x51   : > { %p717_p8 = pneg %p716_p7 }
  0x53   : > { %p722_p12 = pnand %p721_p11, %p717_p8 }
  0x55   : > { %725 = shalt.err (!%p722_p12)
}
  0x56   : > { %661 = dma.vmem_to_hbm [thread:$0]  (%p821_p5), %s536_s27, 128, %s533_s30, %s444_s11  }
  0x57 PF: > { %p667_p13 = scmp.ge.s32.totalorder %s760_s15, 2  ;;  %s554_s20 = sand.u32 1, %s748_s12  }
  0x58   : > { %s555_s25 = scalar_lea.sflag [#allocation4], %s554_s20 }
  0x59   : > { %p664_p0 = pnand %p667_p13, %p825_p6 }
  0x5b   : > { %p665_p1 = pneg %p664_p0 }
  0x5d   : > { %743 = dma.done.wait (%p665_p1), %s555_s25, 128  }
  0x5e   : > { %745 = vsyncadd (%p665_p1), %s555_s25, 4294967168  ;;  %p14_p2 = scmp.ge.s32.totalorder %s808_s18, 6   ;;  %s999_s12 = smov %s752_s13 }
  0x5f   : > { %s1000_s13 = smov %s756_s14  ;;  %s1001_s14 = smov %s819_s21 }
  0x60   : > { %s1002_s15 = smov %s808_s18  ;;  %16 = sbr.rel (!%p14_p2) target bundleno = 3 (0x3), region = 128 }
  0x65   :  { %560 = vsyncpa [#allocation4], 1 }
  0x66   :  { %562 = vsyncpa [#allocation4 + $0x1], 1 }

</bundles_post_ra>
